<compile_context>
chip_gen: v7x
topology: tpu7x:2x2x1
jax: 0.10.0
libtpu: 0.0.40
codegen_flags: <defaults>
</compile_context>

<pallas_src>
import functools
import math

import jax
import jax.numpy as jnp
import numpy as np
from jax.experimental import pallas as pl
from jax.experimental.pallas import tpu as pltpu

_LANE = 512       # lane-dense last dim (multiple of 128)
_ROW_TILE = 256   # row tile -> (256, 512) f32 = 512 KiB per array per pipeline buffer


def _srm0_kernel(in_ref, syn_pre_ref, syn_post_ref, mem_ref,
                 spk_out, syn_pre_out, syn_post_out, mem_out,
                 *, alpha, beta, threshold, tau_srm):
    x = in_ref[...]
    syn_pre = syn_pre_ref[...]
    syn_post = syn_post_ref[...]
    mem = mem_ref[...]

    one = jnp.float32(1.0)
    zero = jnp.float32(0.0)

    # Heaviside: spike if mem - threshold >= 0
    spk = jnp.where(mem - jnp.float32(threshold) >= zero, one, zero)
    reset = spk          # torch detaches this copy; identical values in the forward pass
    keep = one - reset

    syn_pre_new = (jnp.float32(alpha) * syn_pre + x) * keep
    syn_post_new = (jnp.float32(beta) * syn_post - x) * keep
    # The reference multiplies (syn_pre' + syn_post') by keep again; keep is exactly
    # 0/1 and both syn terms already carry that factor, so the extra multiply is
    # dropped (bit-identical result, one fewer VALU op).
    mem_new = (jnp.float32(tau_srm) * (syn_pre_new + syn_post_new)
               + (mem * reset - reset))

    spk_out[...] = spk
    syn_pre_out[...] = syn_pre_new
    syn_post_out[...] = syn_post_new
    mem_out[...] = mem_new


def _pack_2d(x, rows, cols):
    flat = x.reshape(-1)
    pad = rows * cols - flat.shape[0]
    if pad:
        flat = jnp.pad(flat, (0, pad))
    return flat.reshape(rows, cols)


@functools.partial(jax.jit, static_argnames=("alpha", "beta", "threshold"))
def srm0_forward(input_, syn_pre, syn_post, mem, *, alpha, beta, threshold=1.0):
    """One SRM0 time step. All four arrays share input_'s shape (any rank), float32."""
    if alpha <= beta:
        raise ValueError("alpha must be greater than beta.")
    if beta == 1.0:
        raise ValueError("beta cannot be 1.")
    tau_srm = float(np.log(alpha) / (np.log(beta) - np.log(alpha)) + 1.0)

    orig_shape = input_.shape
    n = math.prod(orig_shape)

    # Flatten into a lane-dense (rows, _LANE) slab and tile rows for pipelining.
    rows_needed = pl.cdiv(n, _LANE)
    if rows_needed >= _ROW_TILE:
        row_tile = _ROW_TILE
        rows = row_tile * pl.cdiv(rows_needed, row_tile)
    else:
        row_tile = max(8, 8 * pl.cdiv(rows_needed, 8))  # keep (8,128) tiling legal
        rows = row_tile

    grid = (rows // row_tile,)
    block = (row_tile, _LANE)
    spec = pl.BlockSpec(block, lambda i: (i, 0))

    args = tuple(_pack_2d(a.astype(jnp.float32), rows, _LANE)
                 for a in (input_, syn_pre, syn_post, mem))

    kernel = functools.partial(
        _srm0_kernel,
        alpha=float(alpha), beta=float(beta),
        threshold=float(threshold), tau_srm=tau_srm,
    )

    out2d = pl.pallas_call(
        kernel,
        out_shape=tuple(jax.ShapeDtypeStruct((rows, _LANE), jnp.float32)
                        for _ in range(4)),
        grid=grid,
        in_specs=[spec] * 4,
        out_specs=[spec] * 4,
        # syn_pre / syn_post / mem are recurrent state: update them in place.
        input_output_aliases={1: 1, 2: 2, 3: 3},
        compiler_params=pltpu.CompilerParams(
            dimension_semantics=("parallel",),
            vmem_limit_bytes=32 * 1024 * 1024,
        ),
    )(*args)

    def _unpack(y):
        return y.reshape(-1)[:n].reshape(orig_shape)

    spk, syn_pre_n, syn_post_n, mem_n = (_unpack(y) for y in out2d)
    return spk, syn_pre_n, syn_post_n, mem_n


def _srm0_reference(input_, syn_pre, syn_post, mem, *, alpha, beta, threshold=1.0):
    tau_srm = np.log(alpha) / (np.log(beta) - np.log(alpha)) + 1.0
    spk = jnp.where(mem - threshold >= 0, 1.0, 0.0).astype(jnp.float32)
    reset = spk
    syn_pre_n = (alpha * syn_pre + input_) * (1 - reset)
    syn_post_n = (beta * syn_post - input_) * (1 - reset)
    mem_n = tau_srm * (syn_pre_n + syn_post_n) * (1 - reset) + (mem * reset - reset)
    return spk, syn_pre_n, syn_post_n, mem_n


def _check(shape, key, alpha, beta, threshold):
    k_in, k_pre, k_post, k_mem = jax.random.split(key, 4)
    input_ = jax.random.normal(k_in, shape, dtype=jnp.float32)
    syn_pre = jax.random.normal(k_pre, shape, dtype=jnp.float32) * 0.5
    syn_post = jax.random.normal(k_post, shape, dtype=jnp.float32) * 0.5
    # shift mem so both spike / no-spike branches of the reset are exercised
    mem = jax.random.normal(k_mem, shape, dtype=jnp.float32) + 0.5

    ref = _srm0_reference(input_, syn_pre, syn_post, mem,
                          alpha=alpha, beta=beta, threshold=threshold)
    got = srm0_forward(input_, syn_pre, syn_post, mem,
                       alpha=alpha, beta=beta, threshold=threshold)
    jax.block_until_ready(got)

    for g, w in zip(got, ref):
        np.testing.assert_allclose(np.asarray(g), np.asarray(w),
                                   rtol=1e-6, atol=1e-6)


if __name__ == "__main__":
    alpha, beta, threshold = 0.9, 0.8, 1.0
    key = jax.random.PRNGKey(0)
    k_small, k_big = jax.random.split(key)

    # small shape consistent with the module demo (single-tile path)
    _check((2, 32), k_small, alpha, beta, threshold)
    # moderately larger shape to exercise the multi-tile pipelined grid path
    _check((256, 1024), k_big, alpha, beta, threshold)

    print("KERNEL_OK")
</pallas_src>

<mosaic_0001>
module attributes {stable_mosaic.version = 11 : i64} {
  func.func @_srm0_kernel(%arg0: i32, %arg1: memref<8x512xf32, #tpu.memory_space<vmem>>, %arg2: memref<8x512xf32, #tpu.memory_space<vmem>>, %arg3: memref<8x512xf32, #tpu.memory_space<vmem>>, %arg4: memref<8x512xf32, #tpu.memory_space<vmem>>, %arg5: memref<8x512xf32, #tpu.memory_space<vmem>>, %arg6: memref<8x512xf32, #tpu.memory_space<vmem>>, %arg7: memref<8x512xf32, #tpu.memory_space<vmem>>, %arg8: memref<8x512xf32, #tpu.memory_space<vmem>>) attributes {dimension_semantics = [#tpu.dimension_semantics<parallel>], iteration_bounds = array<i64: 1>, scalar_prefetch = 0 : i64, scratch_operands = 0 : i64, tpu.core_type = #tpu.core_type<tc>, window_params = [{transform_indices = @transform_0, window_bounds = array<i64: 8, 512>}, {transform_indices = @transform_1, window_bounds = array<i64: 8, 512>}, {transform_indices = @transform_2, window_bounds = array<i64: 8, 512>}, {transform_indices = @transform_3, window_bounds = array<i64: 8, 512>}, {transform_indices = @transform_4, window_bounds = array<i64: 8, 512>}, {transform_indices = @transform_5, window_bounds = array<i64: 8, 512>}, {transform_indices = @transform_6, window_bounds = array<i64: 8, 512>}, {transform_indices = @transform_7, window_bounds = array<i64: 8, 512>}]} {
    %c0 = arith.constant 0 : index
    %c0_0 = arith.constant 0 : index
    %0 = vector.load %arg1[%c0, %c0_0] : memref<8x512xf32, #tpu.memory_space<vmem>>, vector<8x512xf32>
    %c0_1 = arith.constant 0 : index
    %c0_2 = arith.constant 0 : index
    %1 = vector.load %arg2[%c0_1, %c0_2] : memref<8x512xf32, #tpu.memory_space<vmem>>, vector<8x512xf32>
    %c0_3 = arith.constant 0 : index
    %c0_4 = arith.constant 0 : index
    %2 = vector.load %arg3[%c0_3, %c0_4] : memref<8x512xf32, #tpu.memory_space<vmem>>, vector<8x512xf32>
    %c0_5 = arith.constant 0 : index
    %c0_6 = arith.constant 0 : index
    %3 = vector.load %arg4[%c0_5, %c0_6] : memref<8x512xf32, #tpu.memory_space<vmem>>, vector<8x512xf32>
    %cst = arith.constant 1.000000e+00 : f32
    %4 = vector.broadcast %cst : f32 to vector<8x512xf32>
    %5 = arith.subf %3, %4 : vector<8x512xf32>
    %cst_7 = arith.constant 0.000000e+00 : f32
    %6 = vector.broadcast %cst_7 : f32 to vector<8x512xf32>
    %7 = arith.cmpf oge, %5, %6 : vector<8x512xf32>
    %cst_8 = arith.constant 1.000000e+00 : f32
    %cst_9 = arith.constant 0.000000e+00 : f32
    %8 = vector.broadcast %cst_8 : f32 to vector<8x512xf32>
    %9 = vector.broadcast %cst_9 : f32 to vector<8x512xf32>
    %10 = arith.select %7, %8, %9 : vector<8x512xi1>, vector<8x512xf32>
    %cst_10 = arith.constant 1.000000e+00 : f32
    %11 = vector.broadcast %cst_10 : f32 to vector<8x512xf32>
    %12 = arith.subf %11, %10 : vector<8x512xf32>
    %cst_11 = arith.constant 0.899999976 : f32
    %13 = vector.broadcast %cst_11 : f32 to vector<8x512xf32>
    %14 = arith.mulf %13, %1 : vector<8x512xf32>
    %15 = arith.addf %14, %0 : vector<8x512xf32>
    %16 = arith.mulf %15, %12 : vector<8x512xf32>
    %cst_12 = arith.constant 8.000000e-01 : f32
    %17 = vector.broadcast %cst_12 : f32 to vector<8x512xf32>
    %18 = arith.mulf %17, %2 : vector<8x512xf32>
    %19 = arith.subf %18, %0 : vector<8x512xf32>
    %20 = arith.mulf %19, %12 : vector<8x512xf32>
    %21 = arith.addf %16, %20 : vector<8x512xf32>
    %cst_13 = arith.constant 1.89453053 : f32
    %22 = vector.broadcast %cst_13 : f32 to vector<8x512xf32>
    %23 = arith.mulf %22, %21 : vector<8x512xf32>
    %24 = arith.mulf %3, %10 : vector<8x512xf32>
    %25 = arith.subf %24, %10 : vector<8x512xf32>
    %26 = arith.addf %23, %25 : vector<8x512xf32>
    %c0_14 = arith.constant 0 : index
    %c0_15 = arith.constant 0 : index
    %27 = vector.load %arg5[%c0_14, %c0_15] : memref<8x512xf32, #tpu.memory_space<vmem>>, vector<8x512xf32>
    tpu.vector_store %arg5[%c0_14, %c0_15], %10 {strides = array<i32>} : memref<8x512xf32, #tpu.memory_space<vmem>>, vector<8x512xf32>,
    %c0_16 = arith.constant 0 : index
    %c0_17 = arith.constant 0 : index
    %28 = vector.load %arg6[%c0_16, %c0_17] : memref<8x512xf32, #tpu.memory_space<vmem>>, vector<8x512xf32>
    tpu.vector_store %arg6[%c0_16, %c0_17], %16 {strides = array<i32>} : memref<8x512xf32, #tpu.memory_space<vmem>>, vector<8x512xf32>,
    %c0_18 = arith.constant 0 : index
    %c0_19 = arith.constant 0 : index
    %29 = vector.load %arg7[%c0_18, %c0_19] : memref<8x512xf32, #tpu.memory_space<vmem>>, vector<8x512xf32>
    tpu.vector_store %arg7[%c0_18, %c0_19], %20 {strides = array<i32>} : memref<8x512xf32, #tpu.memory_space<vmem>>, vector<8x512xf32>,
    %c0_20 = arith.constant 0 : index
    %c0_21 = arith.constant 0 : index
    %30 = vector.load %arg8[%c0_20, %c0_21] : memref<8x512xf32, #tpu.memory_space<vmem>>, vector<8x512xf32>
    tpu.vector_store %arg8[%c0_20, %c0_21], %26 {strides = array<i32>} : memref<8x512xf32, #tpu.memory_space<vmem>>, vector<8x512xf32>,
    return
  }
  func.func @transform_0(%arg0: i32) -> (i32, i32) {
    %c0_i32 = arith.constant 0 : i32
    %c0_i32_0 = arith.constant 0 : i32
    return %arg0, %c0_i32 : i32, i32
  }
  func.func @transform_1(%arg0: i32) -> (i32, i32) {
    %c0_i32 = arith.constant 0 : i32
    %c0_i32_0 = arith.constant 0 : i32
    return %arg0, %c0_i32 : i32, i32
  }
  func.func @transform_2(%arg0: i32) -> (i32, i32) {
    %c0_i32 = arith.constant 0 : i32
    %c0_i32_0 = arith.constant 0 : i32
    return %arg0, %c0_i32 : i32, i32
  }
  func.func @transform_3(%arg0: i32) -> (i32, i32) {
    %c0_i32 = arith.constant 0 : i32
    %c0_i32_0 = arith.constant 0 : i32
    return %arg0, %c0_i32 : i32, i32
  }
  func.func @transform_4(%arg0: i32) -> (i32, i32) {
    %c0_i32 = arith.constant 0 : i32
    %c0_i32_0 = arith.constant 0 : i32
    return %arg0, %c0_i32 : i32, i32
  }
  func.func @transform_5(%arg0: i32) -> (i32, i32) {
    %c0_i32 = arith.constant 0 : i32
    %c0_i32_0 = arith.constant 0 : i32
    return %arg0, %c0_i32 : i32, i32
  }
  func.func @transform_6(%arg0: i32) -> (i32, i32) {
    %c0_i32 = arith.constant 0 : i32
    %c0_i32_0 = arith.constant 0 : i32
    return %arg0, %c0_i32 : i32, i32
  }
  func.func @transform_7(%arg0: i32) -> (i32, i32) {
    %c0_i32 = arith.constant 0 : i32
    %c0_i32_0 = arith.constant 0 : i32
    return %arg0, %c0_i32 : i32, i32
  }
}

</mosaic_0001>

<bundles_post_ra>
// kernel: srm0_forward.1
= control target key start
LH: loop header
LB: loop body
LE: loop exit
PB: predicated region body
PF: predicated region fallthrough
CT: control target
= control target key end

     0   :  { %v134_v13 = vmov 0.0   ;;  %s298_s3 = inlined_call_operand.vmem [shape: f32[8,512], index: 3, kind: input, shape index: {}, may-alias: {3,7}]   ;;  %s299_s1 = inlined_call_operand.vmem [shape: f32[8,512], index: 1, kind: input, shape index: {}, may-alias: {1,5}]   ;;  %s300_s0 = inlined_call_operand.vmem [shape: f32[8,512], index: 0, kind: input, shape index: {}]   ;;  %s301_s4 = inlined_call_operand.vmem [shape: f32[8,512], index: 4, kind: output, shape index: {0}]   ;;  %s302_s2 = inlined_call_operand.vmem [shape: f32[8,512], index: 2, kind: input, shape index: {}, may-alias: {2,6}]   ;;  %s303_s5 = inlined_call_operand.vmem [shape: f32[8,512], index: 5, kind: output, shape index: {1}, may-alias: {1,5}]   ;;  %s304_s6 = inlined_call_operand.vmem [shape: f32[8,512], index: 6, kind: output, shape index: {2}, may-alias: {2,6}]   ;;  %s305_s7 = inlined_call_operand.vmem [shape: f32[8,512], index: 7, kind: output, shape index: {3}, may-alias: {3,7}]  }
   0x1   :  { %v33_v0 = vld [vmem:[%s298_s3] sm:$0xff]  ;;  %v34_v1 = vld [vmem:[%s298_s3 + $0x8] sm:$0xff]  ;;  %v35_v2 = vld [vmem:[%s298_s3 + $0x10] sm:$0xff] }
   0x2   :  { %v129_v3 = vadd.f32 -1.0, %v33_v0  ;;  %v130_v4 = vadd.f32 -1.0, %v34_v1  ;;  %v131_v5 = vadd.f32 -1.0, %v35_v2  ;;  %v36_v6 = vld [vmem:[%s298_s3 + $0x18] sm:$0xff]  ;;  %v25_v7 = vld [vmem:[%s299_s1] sm:$0xff]  ;;  %v26_v10 = vld [vmem:[%s299_s1 + $0x8] sm:$0xff] }
   0x3   :  { %v132_v8 = vadd.f32 -1.0, %v36_v6  ;;  %v53_v9 = vmul.f32 0.9, %v25_v7  ;;  %v21_v11 = vld [vmem:[%s300_s0] sm:$0xff]  ;;  %v54_v12 = vmul.f32 0.9, %v26_v10 }
   0x4   :  { %vm41_vm0 = vcmp.ge.f32.partialorder %v129_v3, 0.0  ;;  %vm42_vm1 = vcmp.ge.f32.partialorder %v130_v4, 0.0  ;;  %vm43_vm2 = vcmp.ge.f32.partialorder %v131_v5, 0.0  ;;  %v22_v17 = vld [vmem:[%s300_s0 + $0x8] sm:$0xff]  ;;  %v27_v18 = vld [vmem:[%s299_s1 + $0x10] sm:$0xff]  ;;  %v28_v21 = vld [vmem:[%s299_s1 + $0x18] sm:$0xff] }
   0x5   :  { %v196_v14 = vsel %vm41_vm0, 1.0, %v134_v13  ;;  %v198_v15 = vsel %vm42_vm1, 1.0, %v134_v13  ;;  %v200_v16 = vsel %vm43_vm2, 1.0, %v134_v13  ;;  %vm44_vm3 = vcmp.ge.f32.partialorder %v132_v8, 0.0  ;;  %v29_v22 = vld [vmem:[%s302_s2] sm:$0xff]  ;;  %v30_v23 = vld [vmem:[%s302_s2 + $0x8] sm:$0xff] }
   0x6   :  { %v209_v19 = vmul.f32 %v196_v14, %v33_v0  ;;  %97 = vst [vmem:[%s301_s4] sm:$0xff] %v196_v14  ;;  %98 = vst [vmem:[%s301_s4 + $0x8] sm:$0xff] %v198_v15  ;;  %v223_v20 = vsel %vm44_vm3, 1.0, %v134_v13  ;;  %v86_v24 = vmul.f32 %v198_v15, %v34_v1  ;;  %v49_v25 = vsub.f32 1.0, %v196_v14  ;;  %v23_v28 = vld [vmem:[%s300_s0 + $0x10] sm:$0xff]  ;;  %v32_v30 = vld [vmem:[%s302_s2 + $0x18] sm:$0xff] }
   0x7   :  { %99 = vst [vmem:[%s301_s4 + $0x10] sm:$0xff] %v200_v16  ;;  %100 = vst [vmem:[%s301_s4 + $0x18] sm:$0xff] %v223_v20  ;;  %v57_v26 = vadd.f32 %v53_v9, %v21_v11  ;;  %v50_v27 = vsub.f32 1.0, %v198_v15  ;;  %v31_v29 = vld [vmem:[%s302_s2 + $0x10] sm:$0xff]  ;;  %v58_v31 = vadd.f32 %v54_v12, %v22_v17  ;;  %v51_v32 = vsub.f32 1.0, %v200_v16  ;;  %v24_v34 = vld [vmem:[%s300_s0 + $0x18] sm:$0xff] }
   0x8   :  { %v55_v33 = vmul.f32 0.9, %v27_v18  ;;  %v52_v35 = vsub.f32 1.0, %v223_v20  ;;  %v56_v37 = vmul.f32 0.9, %v28_v21  ;;  %v87_v44 = vmul.f32 %v200_v16, %v35_v2 }
   0x9   :  { %v61_v36 = vmul.f32 %v57_v26, %v49_v25  ;;  %v65_v38 = vmul.f32 0.8, %v29_v22  ;;  %v66_v39 = vmul.f32 0.8, %v30_v23  ;;  %v62_v40 = vmul.f32 %v58_v31, %v50_v27 }
   0xa   :  { %v59_v41 = vadd.f32 %v55_v33, %v23_v28  ;;  %v67_v42 = vmul.f32 0.8, %v31_v29  ;;  %v68_v43 = vmul.f32 0.8, %v32_v30  ;;  %v60_v45 = vadd.f32 %v56_v37, %v24_v34 }
   0xb   :  { %101 = vst [vmem:[%s303_s5] sm:$0xff] %v61_v36  ;;  %v69_v46 = vsub.f32 %v65_v38, %v21_v11  ;;  %v70_v47 = vsub.f32 %v66_v39, %v22_v17  ;;  %v88_v48 = vmul.f32 %v223_v20, %v36_v6  ;;  %102 = vst [vmem:[%s303_s5 + $0x8] sm:$0xff] %v62_v40 }
   0xc   :  { %v63_v49 = vmul.f32 %v59_v41, %v51_v32  ;;  %v71_v50 = vsub.f32 %v67_v42, %v23_v28  ;;  %v72_v51 = vsub.f32 %v68_v43, %v24_v34  ;;  %v64_v52 = vmul.f32 %v60_v45, %v52_v35 }
   0xd   :  { %v73_v53 = vmul.f32 %v69_v46, %v49_v25  ;;  %v74_v54 = vmul.f32 %v70_v47, %v50_v27  ;;  %v89_v59 = vsub.f32 %v209_v19, %v196_v14  ;;  %v90_v60 = vsub.f32 %v86_v24, %v198_v15 }
   0xe   :  { %103 = vst [vmem:[%s303_s5 + $0x10] sm:$0xff] %v63_v49  ;;  %v75_v55 = vmul.f32 %v71_v50, %v51_v32  ;;  %v76_v56 = vmul.f32 %v72_v51, %v52_v35  ;;  %104 = vst [vmem:[%s303_s5 + $0x18] sm:$0xff] %v64_v52  ;;  %v91_v63 = vsub.f32 %v87_v44, %v200_v16 }
   0xf   :  { %v77_v57 = vadd.f32 %v73_v53, %v61_v36  ;;  %105 = vst [vmem:[%s304_s6] sm:$0xff] %v73_v53  ;;  %v78_v58 = vadd.f32 %v74_v54, %v62_v40  ;;  %106 = vst [vmem:[%s304_s6 + $0x8] sm:$0xff] %v74_v54  ;;  %v92_v0 = vsub.f32 %v88_v48, %v223_v20 }
  0x10   :  { %v79_v61 = vadd.f32 %v75_v55, %v63_v49  ;;  %107 = vst [vmem:[%s304_s6 + $0x10] sm:$0xff] %v75_v55  ;;  %v80_v62 = vadd.f32 %v76_v56, %v64_v52  ;;  %108 = vst [vmem:[%s304_s6 + $0x18] sm:$0xff] %v76_v56 }
  0x11   :  { %v81_v1 = vmul.f32 1.8945305, %v77_v57  ;;  %v82_v2 = vmul.f32 1.8945305, %v78_v58 }
  0x12   :  { %v83_v3 = vmul.f32 1.8945305, %v79_v61  ;;  %v84_v4 = vmul.f32 1.8945305, %v80_v62 }
  0x13   :  { %v93_v5 = vadd.f32 %v89_v59, %v81_v1  ;;  %v94_v6 = vadd.f32 %v90_v60, %v82_v2 }
  0x14   :  { %v95_v7 = vadd.f32 %v91_v63, %v83_v3  ;;  %v96_v8 = vadd.f32 %v92_v0, %v84_v4 }
  0x15   :  { %109 = vst [vmem:[%s305_s7] sm:$0xff] %v93_v5  ;;  %110 = vst [vmem:[%s305_s7 + $0x8] sm:$0xff] %v94_v6 }
  0x16   :  { %111 = vst [vmem:[%s305_s7 + $0x10] sm:$0xff] %v95_v7  ;;  %112 = vst [vmem:[%s305_s7 + $0x18] sm:$0xff] %v96_v8 }

</bundles_post_ra>
